<compile_context>
chip_gen: v7x
topology: tpu7x:2x2x1
jax: 0.10.0
libtpu: 0.0.40
codegen_flags: <defaults>
</compile_context>

<pallas_src>
import functools

import jax
import jax.numpy as jnp
from jax.experimental import pallas as pl
from jax.experimental.pallas import tpu as pltpu

IN_FEATURES = 784
HIDDEN = 512
OUT_FEATURES = 10
OUT_PADDED = 128          # lane-dense output width
_NEG_INF = -1e30


def _net_kernel(x_ref, w1_ref, w2_ref, out_ref):
    # x_ref:   [tm, 784]  f32   (one batch tile)
    # w1_ref:  [784, 512] bf16  (fc1 weight, [in, out], resident across tiles)
    # w2_ref:  [512, 128] bf16  (fc2 weight, [in, out_padded], resident)
    # out_ref: [tm, 128]  f32   (softmax probs; cols >= 10 are zero)
    x = x_ref[...].astype(jnp.bfloat16)

    # fc1 + ReLU (f32 accumulation on the MXU).
    h = jnp.dot(x, w1_ref[...], preferred_element_type=jnp.float32)
    h = jnp.maximum(h, 0.0).astype(jnp.bfloat16)

    # fc2 into the lane-padded logits; mask padding before the softmax.
    logits = jnp.dot(h, w2_ref[...], preferred_element_type=jnp.float32)
    col = jax.lax.broadcasted_iota(jnp.int32, logits.shape, 1)
    logits = jnp.where(col < OUT_FEATURES, logits, _NEG_INF)

    # Numerically stable softmax over dim=1.
    m = jnp.max(logits, axis=1, keepdims=True)
    e = jnp.exp(logits - m)
    denom = jnp.sum(e, axis=1, keepdims=True)
    out_ref[...] = (e * pl.reciprocal(denom, approx=True)).astype(out_ref.dtype)


def prepare_params(w1, w2):
    """One-time preprocessing of PyTorch-layout weights ([out, in], f32).

    Returns (w1_t [784,512] bf16, w2_t [512,128] bf16). Do this outside the hot
    path so no transpose / pad / cast traffic is paid per forward call.
    """
    w1_t = jnp.asarray(w1, jnp.float32).T.astype(jnp.bfloat16)            # [784, 512]
    w2_p = jnp.pad(jnp.asarray(w2, jnp.float32),
                   ((0, OUT_PADDED - OUT_FEATURES), (0, 0)))              # [128, 512]
    w2_t = w2_p.T.astype(jnp.bfloat16)                                    # [512, 128]
    return w1_t, w2_t


def _round_up(n, m):
    return (n + m - 1) // m * m


@functools.partial(jax.jit, static_argnames=("tile_m",))
def net_forward(x, w1_t, w2_t, *, tile_m=256):
    """Net.forward: softmax(relu(x.view(-1,784) @ W1^T) @ W2^T, dim=1)."""
    x2d = x.reshape(-1, IN_FEATURES).astype(jnp.float32)
    b = x2d.shape[0]

    tm = min(tile_m, _round_up(b, 8))
    padded_b = _round_up(b, tm)
    if padded_b != b:
        x2d = jnp.pad(x2d, ((0, padded_b - b), (0, 0)))
    grid = (padded_b // tm,)

    out = pl.pallas_call(
        _net_kernel,
        out_shape=jax.ShapeDtypeStruct((padded_b, OUT_PADDED), jnp.float32),
        grid=grid,
        in_specs=[
            pl.BlockSpec((tm, IN_FEATURES), lambda i: (i, 0)),      # x tile streams
            pl.BlockSpec((IN_FEATURES, HIDDEN), lambda i: (0, 0)),  # w1 resident
            pl.BlockSpec((HIDDEN, OUT_PADDED), lambda i: (0, 0)),   # w2 resident
        ],
        out_specs=pl.BlockSpec((tm, OUT_PADDED), lambda i: (i, 0)),
        compiler_params=pltpu.CompilerParams(
            dimension_semantics=("parallel",),
            vmem_limit_bytes=32 << 20,
        ),
    )(x2d, w1_t, w2_t)

    return out[:b, :OUT_FEATURES]


def _reference_forward(x, w1, w2):
    # Pure-JAX f32 reference of the PyTorch forward.
    x2d = x.reshape(-1, IN_FEATURES)
    h = jax.nn.relu(x2d @ w1.T)
    return jax.nn.softmax(h @ w2.T, axis=1)


if __name__ == "__main__":
    key = jax.random.PRNGKey(0)
    k_x, k_x2, k_w1, k_w2 = jax.random.split(key, 4)

    # Parameters in PyTorch nn.Linear layout [out, in], kaiming_uniform-like bounds.
    w1 = jax.random.uniform(k_w1, (HIDDEN, IN_FEATURES), jnp.float32,
                            minval=-1.0 / (IN_FEATURES ** 0.5),
                            maxval=1.0 / (IN_FEATURES ** 0.5))
    w2 = jax.random.uniform(k_w2, (OUT_FEATURES, HIDDEN), jnp.float32,
                            minval=-1.0 / (HIDDEN ** 0.5),
                            maxval=1.0 / (HIDDEN ** 0.5))

    # One-time weight preparation (outside the hot forward path).
    w1_t, w2_t = prepare_params(w1, w2)

    # TODO(synk): self.layer_input activation caching is Python-side bookkeeping
    # with no compute; not reproduced in the kernel.

    # --- Test 1: MNIST-like small batch [8, 1, 28, 28] (single grid step). ---
    x = jax.random.normal(k_x, (8, 1, 28, 28), dtype=jnp.float32)
    out = jax.block_until_ready(net_forward(x, w1_t, w2_t))
    ref = _reference_forward(x, w1, w2)
    assert out.shape == (8, OUT_FEATURES)
    assert jnp.allclose(jnp.sum(out, axis=1), 1.0, atol=5e-3)
    assert jnp.allclose(out, ref, atol=2e-2, rtol=2e-2)   # bf16 MXU path => relaxed tol

    # --- Test 2: ragged batch to exercise the multi-tile grid + padding path. ---
    x2 = jax.random.normal(k_x2, (260, 1, 28, 28), dtype=jnp.float32)
    out2 = jax.block_until_ready(net_forward(x2, w1_t, w2_t, tile_m=128))
    ref2 = _reference_forward(x2, w1, w2)
    assert out2.shape == (260, OUT_FEATURES)
    assert jnp.allclose(jnp.sum(out2, axis=1), 1.0, atol=5e-3)
    assert jnp.allclose(out2, ref2, atol=2e-2, rtol=2e-2)

    print("KERNEL_OK")
</pallas_src>

<mosaic_0001>
module attributes {stable_mosaic.version = 11 : i64} {
  func.func @_net_kernel(%arg0: i32, %arg1: memref<8x784xf32, #tpu.memory_space<vmem>>, %arg2: memref<784x512xbf16, #tpu.memory_space<vmem>>, %arg3: memref<512x128xbf16, #tpu.memory_space<vmem>>, %arg4: memref<8x128xf32, #tpu.memory_space<vmem>>) attributes {dimension_semantics = [#tpu.dimension_semantics<parallel>], iteration_bounds = array<i64: 1>, scalar_prefetch = 0 : i64, scratch_operands = 0 : i64, tpu.core_type = #tpu.core_type<tc>, window_params = [{transform_indices = @transform_0, window_bounds = array<i64: 8, 784>}, {pipeline_mode = #tpu.pipeline_mode<synchronous>, transform_indices = @transform_1, window_bounds = array<i64: 784, 512>}, {pipeline_mode = #tpu.pipeline_mode<synchronous>, transform_indices = @transform_2, window_bounds = array<i64: 512, 128>}, {transform_indices = @transform_3, window_bounds = array<i64: 8, 128>}]} {
    %c0 = arith.constant 0 : index
    %c0_0 = arith.constant 0 : index
    %0 = vector.load %arg1[%c0, %c0_0] : memref<8x784xf32, #tpu.memory_space<vmem>>, vector<8x784xf32>
    %1 = arith.truncf %0 : vector<8x784xf32> to vector<8x784xbf16>
    %c0_1 = arith.constant 0 : index
    %c0_2 = arith.constant 0 : index
    %2 = vector.load %arg2[%c0_1, %c0_2] : memref<784x512xbf16, #tpu.memory_space<vmem>>, vector<784x512xbf16>
    %cst = arith.constant dense<0.000000e+00> : vector<8x512xf32>
    %3 = tpu.matmul %1, %2, %cst {dimension_numbers = #tpu.dot_dimension_numbers<[1], [0], [0], [1], [0, 0, 1, 1], [], []>} : vector<8x784xbf16>, vector<784x512xbf16>, vector<8x512xf32> -> vector<8x512xf32>
    %cst_3 = arith.constant 0.000000e+00 : f32
    %4 = vector.broadcast %cst_3 : f32 to vector<8x512xf32>
    %5 = arith.maximumf %3, %4 : vector<8x512xf32>
    %6 = arith.truncf %5 : vector<8x512xf32> to vector<8x512xbf16>
    %c0_4 = arith.constant 0 : index
    %c0_5 = arith.constant 0 : index
    %7 = vector.load %arg3[%c0_4, %c0_5] : memref<512x128xbf16, #tpu.memory_space<vmem>>, vector<512x128xbf16>
    %cst_6 = arith.constant dense<0.000000e+00> : vector<8x128xf32>
    %8 = tpu.matmul %6, %7, %cst_6 {dimension_numbers = #tpu.dot_dimension_numbers<[1], [0], [0], [1], [0, 0, 1, 1], [], []>} : vector<8x512xbf16>, vector<512x128xbf16>, vector<8x128xf32> -> vector<8x128xf32>
    %9 = tpu.iota {dimensions = array<i32: 1>} : vector<8x128xi32>
    %c10_i32 = arith.constant 10 : i32
    %10 = vector.broadcast %c10_i32 : i32 to vector<8x128xi32>
    %11 = arith.cmpi slt, %9, %10 : vector<8x128xi32>
    %cst_7 = arith.constant -1.000000e+30 : f32
    %12 = vector.broadcast %cst_7 : f32 to vector<8x128xf32>
    %13 = arith.select %11, %8, %12 : vector<8x128xi1>, vector<8x128xf32>
    %cst_8 = arith.constant dense<0xFF800000> : vector<8xf32>
    %14 = vector.multi_reduction <maximumf>, %13, %cst_8 [1] : vector<8x128xf32> to vector<8xf32>
    %15 = vector.shape_cast %14 : vector<8xf32> to vector<8x1xf32>
    %16 = vector.broadcast %15 : vector<8x1xf32> to vector<8x128xf32>
    %17 = arith.subf %13, %16 : vector<8x128xf32>
    %18 = math.exp %17 : vector<8x128xf32>
    %cst_9 = arith.constant dense<0.000000e+00> : vector<8xf32>
    %19 = vector.multi_reduction <add>, %18, %cst_9 [1] : vector<8x128xf32> to vector<8xf32>
    %20 = vector.shape_cast %19 : vector<8xf32> to vector<8x1xf32>
    %21 = tpu.reciprocal %20 {approx = true} : vector<8x1xf32> -> vector<8x1xf32>
    %22 = vector.broadcast %21 : vector<8x1xf32> to vector<8x128xf32>
    %23 = arith.mulf %18, %22 : vector<8x128xf32>
    %c0_10 = arith.constant 0 : index
    %c0_11 = arith.constant 0 : index
    %24 = vector.load %arg4[%c0_10, %c0_11] : memref<8x128xf32, #tpu.memory_space<vmem>>, vector<8x128xf32>
    tpu.vector_store %arg4[%c0_10, %c0_11], %23 {strides = array<i32>} : memref<8x128xf32, #tpu.memory_space<vmem>>, vector<8x128xf32>,
    return
  }
  func.func @transform_0(%arg0: i32) -> (i32, i32) {
    %c0_i32 = arith.constant 0 : i32
    %c0_i32_0 = arith.constant 0 : i32
    return %arg0, %c0_i32 : i32, i32
  }
  func.func @transform_1(%arg0: i32) -> (i32, i32) {
    %c0_i32 = arith.constant 0 : i32
    %c0_i32_0 = arith.constant 0 : i32
    %c0_i32_1 = arith.constant 0 : i32
    return %c0_i32, %c0_i32_0 : i32, i32
  }
  func.func @transform_2(%arg0: i32) -> (i32, i32) {
    %c0_i32 = arith.constant 0 : i32
    %c0_i32_0 = arith.constant 0 : i32
    %c0_i32_1 = arith.constant 0 : i32
    return %c0_i32, %c0_i32_0 : i32, i32
  }
  func.func @transform_3(%arg0: i32) -> (i32, i32) {
    %c0_i32 = arith.constant 0 : i32
    %c0_i32_0 = arith.constant 0 : i32
    return %arg0, %c0_i32 : i32, i32
  }
}

</mosaic_0001>

<bundles_post_ra>
// kernel: net_forward.1
= control target key start
LH: loop header
LB: loop body
LE: loop exit
PB: predicated region body
PF: predicated region fallthrough
CT: control target
= control target key end

     0   :  { %8 = vsyncpa [#allocation3], 0  ;;  %s2772_s0 = inlined_call_operand.vmem [shape: f32[8,784], index: 0, kind: input, shape index: {}]   ;;  %s2773_s1 = inlined_call_operand.hbm [shape: bf16[784,512], index: 1, kind: input, shape index: {}]   ;;  %s2774_s2 = inlined_call_operand.vmem [shape: bf16[512,128], index: 2, kind: input, shape index: {}]   ;;  %s2775_s3 = inlined_call_operand.hbm [shape: f32[8,128], index: 3, kind: output, shape index: {}]  }
   0x1   :  { %9 = vsyncpa [#allocation4], 0  ;;  %s2606_s12 = smov [#allocation2]   ;;  %s2558_s16 = scalar_lea.hbm %s2773_s1, 25088 }
   0x2   :  { %s17_s13 = sshll.u32 %s2606_s12, 4  ;;  %p2559_p0 = scmp.ne.s32.totalorder %s2773_s1, %s2558_s16  ;;  %s18_s13 = int_to_ptr.vmem [resolvable:$true] %s17_s13 }
   0x3   :  { %p2562_p1 = scmp.lt.u32.totalorder %s2558_s16, %s2773_s1 }
   0x5   :  { %p2564_p2 = pnand %p2562_p1, %p2559_p0 }
   0x7   :  { %2567 = shalt.err (!%p2564_p2)
}
   0x8   :  { %s2568_s21 = scalar_lea.vmem %s18_s13, 25088  ;;  %p2573_p4 = scmp.lt.s32.totalorder %s18_s13, %s18_s13 }
   0x9   :  { %p2569_p3 = scmp.ne.s32.totalorder %s18_s13, %s2568_s21  ;;  %p2574_p5 = scmp.lt.s32.totalorder %s2568_s21, %s2568_s21 }
   0xb   :  { %p2575_p6 = por %p2574_p5, %p2573_p4 }
   0xd   :  { %p2576_p7 = pnand %p2575_p6, %p2569_p3 }
   0xf   :  { %2579 = shalt.err (!%p2576_p7)
}
  0x10   :  { %s2607_s22 = smov 256   ;;  %s2608_s23 = smov 16  }
  0x11   :  { %23 = dma.hbm_to_vmem [thread:$0]  %s2773_s1, 25088, %s18_s13, [#allocation3], %s2607_s22, %s2607_s22, %s2608_s23  }
  0x12   :  { %2602 = dma.done.wait [#allocation3], 25088  }
  0x13   :  { %2603 = vsyncadd [#allocation3], 4294942208  ;;  %v2228_v0 = vld [vmem:[#allocation2 + $0x4] ss:$16 sps:$4 sm:$0xff]   ;;  %v2230_v1 = vld [vmem:[#allocation2 + $0xc] ss:$16 sps:$4 sm:$0xff]  }
  0x14   :  { %1224 = vmatprep.subr.bf16.mxu0 %v2228_v0  ;;  %v2232_v2 = vld [vmem:[#allocation2] ss:$16 sps:$4 sm:$0xff]   ;;  %v2233_v3 = vld [vmem:[#allocation2 + $0x8] ss:$16 sps:$4 sm:$0xff]   ;;  %1388 = vmatprep.subr.bf16.mxu1 %v2230_v1  ;;  %v2234_v4 = vld [vmem:[#allocation2 + $0x24] ss:$16 sps:$4 sm:$0xff]  }
  0x15   :  { %1225 = vmatpush1.bf16.msra.mxu0 %v2232_v2  ;;  %1389 = vmatpush1.bf16.msra.mxu1 %v2233_v3  ;;  %v2236_v5 = vld [vmem:[#allocation2 + $0x2c] ss:$16 sps:$4 sm:$0xff]   ;;  %v2238_v6 = vld [vmem:[#allocation2 + $0x20] ss:$16 sps:$4 sm:$0xff]   ;;  %v2239_v7 = vld [vmem:[#allocation2 + $0x28] ss:$16 sps:$4 sm:$0xff]  }
  0x16   :  { %1226 = vmatprep.subr.bf16.mxu0 %v2234_v4  ;;  %1390 = vmatprep.subr.bf16.mxu1 %v2236_v5  ;;  %v2240_v8 = vld [vmem:[#allocation2 + $0x44] ss:$16 sps:$4 sm:$0xff]   ;;  %v2242_v9 = vld [vmem:[#allocation2 + $0x4c] ss:$16 sps:$4 sm:$0xff]   ;;  %v2244_v10 = vld [vmem:[#allocation2 + $0x40] ss:$16 sps:$4 sm:$0xff]  }
  0x17   :  { %v2245_v11 = vld [vmem:[#allocation2 + $0x48] ss:$16 sps:$4 sm:$0xff]   ;;  %v2246_v12 = vld [vmem:[#allocation2 + $0x64] ss:$16 sps:$4 sm:$0xff]   ;;  %v2248_v13 = vld [vmem:[#allocation2 + $0x6c] ss:$16 sps:$4 sm:$0xff]  }
  0x18   :  { %v2250_v14 = vld [vmem:[#allocation2 + $0x60] ss:$16 sps:$4 sm:$0xff]   ;;  %v2251_v15 = vld [vmem:[#allocation2 + $0x68] ss:$16 sps:$4 sm:$0xff]   ;;  %v2252_v16 = vld [vmem:[#allocation2 + $0x84] ss:$16 sps:$4 sm:$0xff]  }
  0x19   :  { %1227 = vmatpush1.bf16.msra.mxu0 %v2238_v6  ;;  %1391 = vmatpush1.bf16.msra.mxu1 %v2239_v7  ;;  %v2254_v17 = vld [vmem:[#allocation2 + $0x8c] ss:$16 sps:$4 sm:$0xff]   ;;  %v2256_v18 = vld [vmem:[#allocation2 + $0x80] ss:$16 sps:$4 sm:$0xff]   ;;  %v2257_v19 = vld [vmem:[#allocation2 + $0x88] ss:$16 sps:$4 sm:$0xff]  }
  0x1a   :  { %1228 = vmatprep.subr.bf16.mxu0 %v2240_v8  ;;  %1392 = vmatprep.subr.bf16.mxu1 %v2242_v9  ;;  %v2258_v20 = vld [vmem:[#allocation2 + $0xa4] ss:$16 sps:$4 sm:$0xff]   ;;  %v2260_v21 = vld [vmem:[#allocation2 + $0xac] ss:$16 sps:$4 sm:$0xff]   ;;  %v2262_v22 = vld [vmem:[#allocation2 + $0xa0] ss:$16 sps:$4 sm:$0xff]  }
  0x1b   :  { %v2263_v23 = vld [vmem:[#allocation2 + $0xa8] ss:$16 sps:$4 sm:$0xff]   ;;  %v2264_v24 = vld [vmem:[#allocation2 + $0xc4] ss:$16 sps:$4 sm:$0xff]   ;;  %v2266_v25 = vld [vmem:[#allocation2 + $0xcc] ss:$16 sps:$4 sm:$0xff]  }
  0x1c   :  { %v2268_v26 = vld [vmem:[#allocation2 + $0xc0] ss:$16 sps:$4 sm:$0xff]   ;;  %v2269_v27 = vld [vmem:[#allocation2 + $0xc8] ss:$16 sps:$4 sm:$0xff]   ;;  %v2270_v28 = vld [vmem:[#allocation2 + $0xe4] ss:$16 sps:$4 sm:$0xff]  }
  0x1d   :  { %1229 = vmatpush1.bf16.msra.mxu0 %v2244_v10  ;;  %1393 = vmatpush1.bf16.msra.mxu1 %v2245_v11  ;;  %v2272_v29 = vld [vmem:[#allocation2 + $0xec] ss:$16 sps:$4 sm:$0xff]   ;;  %v2274_v30 = vld [vmem:[#allocation2 + $0xe0] ss:$16 sps:$4 sm:$0xff]   ;;  %v2275_v31 = vld [vmem:[#allocation2 + $0xe8] ss:$16 sps:$4 sm:$0xff]  }
  0x1e   :  { %1230 = vmatprep.subr.bf16.mxu0 %v2246_v12  ;;  %1394 = vmatprep.subr.bf16.mxu1 %v2248_v13  ;;  %v2276_v32 = vld [vmem:[#allocation2 + $0x104] ss:$16 sps:$4 sm:$0xff]   ;;  %v2278_v33 = vld [vmem:[#allocation2 + $0x10c] ss:$16 sps:$4 sm:$0xff]   ;;  %v2280_v34 = vld [vmem:[#allocation2 + $0x100] ss:$16 sps:$4 sm:$0xff]  }
  0x1f   :  { %v2281_v35 = vld [vmem:[#allocation2 + $0x108] ss:$16 sps:$4 sm:$0xff]   ;;  %v2282_v36 = vld [vmem:[#allocation2 + $0x124] ss:$16 sps:$4 sm:$0xff]   ;;  %v2284_v37 = vld [vmem:[#allocation2 + $0x12c] ss:$16 sps:$4 sm:$0xff]  }
  0x20   :  { %v2286_v38 = vld [vmem:[#allocation2 + $0x120] ss:$16 sps:$4 sm:$0xff]   ;;  %v2287_v39 = vld [vmem:[#allocation2 + $0x128] ss:$16 sps:$4 sm:$0xff]   ;;  %v2288_v40 = vld [vmem:[#allocation2 + $0x144] ss:$16 sps:$4 sm:$0xff]  }
  0x21   :  { %1231 = vmatpush1.bf16.msra.mxu0 %v2250_v14  ;;  %1395 = vmatpush1.bf16.msra.mxu1 %v2251_v15  ;;  %v2290_v41 = vld [vmem:[#allocation2 + $0x14c] ss:$16 sps:$4 sm:$0xff]   ;;  %v2292_v42 = vld [vmem:[#allocation2 + $0x140] ss:$16 sps:$4 sm:$0xff]   ;;  %v2293_v43 = vld [vmem:[#allocation2 + $0x148] ss:$16 sps:$4 sm:$0xff]  }
  0x22   :  { %1232 = vmatprep.subr.bf16.mxu0 %v2252_v16  ;;  %1396 = vmatprep.subr.bf16.mxu1 %v2254_v17  ;;  %v2294_v44 = vld [vmem:[#allocation2 + $0x164] ss:$16 sps:$4 sm:$0xff]   ;;  %v2296_v45 = vld [vmem:[#allocation2 + $0x16c] ss:$16 sps:$4 sm:$0xff]   ;;  %v2298_v47 = vld [vmem:[#allocation2 + $0x160] ss:$16 sps:$4 sm:$0xff]  }
  0x23   :  { %v31_v46 = vld [vmem:[%s2772_s0 + $0x8] sm:$0xff]  ;;  %v2300_v50 = vld [vmem:[#allocation2 + $0x184] ss:$16 sps:$4 sm:$0xff]   ;;  %v2304_v52 = vld [vmem:[#allocation2 + $0x180] ss:$16 sps:$4 sm:$0xff]   ;;  %vm1220_vm0 = vcmask 130048  }
  0x24   :  { %v38_v48 = vpack.c.bf16 %v31_v46, %v31_v46  ;;  %v2299_v49 = vld [vmem:[#allocation2 + $0x168] ss:$16 sps:$4 sm:$0xff]   ;;  %v2302_v51 = vld [vmem:[#allocation2 + $0x18c] ss:$16 sps:$4 sm:$0xff]   ;;  %v2306_v54 = vld [vmem:[#allocation2 + $0x1a4] ss:$16 sps:$4 sm:$0xff]  }
  0x25   :  { %1233 = vmatpush1.bf16.msra.mxu0 %v2256_v18  ;;  %1397 = vmatpush1.bf16.msra.mxu1 %v2257_v19  ;;  %v2305_v53 = vld [vmem:[#allocation2 + $0x188] ss:$16 sps:$4 sm:$0xff]   ;;  %v2308_v55 = vld [vmem:[#allocation2 + $0x1ac] ss:$16 sps:$4 sm:$0xff]   ;;  %v2310_v56 = vld [vmem:[#allocation2 + $0x1a0] ss:$16 sps:$4 sm:$0xff]  }
  0x26   :  { %1234 = vmatprep.subr.bf16.mxu0 %v2258_v20  ;;  %1398 = vmatprep.subr.bf16.mxu1 %v2260_v21  ;;  %v2311_v57 = vld [vmem:[#allocation2 + $0x1a8] ss:$16 sps:$4 sm:$0xff]   ;;  %v2312_v58 = vld [vmem:[#allocation2 + $0x1c4] ss:$16 sps:$4 sm:$0xff]   ;;  %v2314_v59 = vld [vmem:[#allocation2 + $0x1cc] ss:$16 sps:$4 sm:$0xff]  }
  0x27   :  { %1256 = vmatprep.mubr.bf16.mxu0 %v38_v48  ;;  %1420 = vmatprep.mubr.bf16.mxu1 %v38_v48  ;;  %v2316_v60 = vld [vmem:[#allocation2 + $0x1c0] ss:$16 sps:$4 sm:$0xff]   ;;  %v2317_v61 = vld [vmem:[#allocation2 + $0x1c8] ss:$16 sps:$4 sm:$0xff]   ;;  %v2318_v62 = vld [vmem:[#allocation2 + $0x1e4] ss:$16 sps:$4 sm:$0xff]  }
  0x28   :  { %v2320_v63 = vld [vmem:[#allocation2 + $0x1ec] ss:$16 sps:$4 sm:$0xff]   ;;  %v2322_v0 = vld [vmem:[#allocation2 + $0x1e0] ss:$16 sps:$4 sm:$0xff]   ;;  %v2323_v1 = vld [vmem:[#allocation2 + $0x1e8] ss:$16 sps:$4 sm:$0xff]  }
  0x29   :  { %1235 = vmatpush1.bf16.msra.mxu0 %v2262_v22  ;;  %1399 = vmatpush1.bf16.msra.mxu1 %v2263_v23  ;;  %v30_v2 = vld [vmem:[%s2772_s0] sm:$0xff]  ;;  %v2329_v4 = vld [vmem:[#allocation2 + $0x20c] ss:$16 sps:$4 sm:$0xff]   ;;  %v2327_v7 = vld [vmem:[#allocation2 + $0x208] ss:$16 sps:$4 sm:$0xff]  }
  0x2a   :  { %1236 = vmatprep.subr.bf16.mxu0 %v2264_v24  ;;  %1400 = vmatprep.subr.bf16.mxu1 %v2266_v25  ;;  %v2326_v3 = vld [vmem:[#allocation2 + $0x204] ss:$16 sps:$4 sm:$0xff]   ;;  %v37_v5 = vpack.c.bf16 %v30_v2, %v30_v2  ;;  %v2324_v6 = vld [vmem:[#allocation2 + $0x200] ss:$16 sps:$4 sm:$0xff]   ;;  %v2335_v9 = vld [vmem:[#allocation2 + $0x22c] ss:$16 sps:$4 sm:$0xff]  }
  0x2b   :  { %v2332_v8 = vld [vmem:[#allocation2 + $0x224] ss:$16 sps:$4 sm:$0xff]   ;;  %v2330_v10 = vld [vmem:[#allocation2 + $0x220] ss:$16 sps:$4 sm:$0xff]   ;;  %v2333_v11 = vld [vmem:[#allocation2 + $0x228] ss:$16 sps:$4 sm:$0xff]  }
  0x2c   :  { %v2338_v12 = vld [vmem:[#allocation2 + $0x244] ss:$16 sps:$4 sm:$0xff]   ;;  %v2341_v13 = vld [vmem:[#allocation2 + $0x24c] ss:$16 sps:$4 sm:$0xff]   ;;  %v2336_v14 = vld [vmem:[#allocation2 + $0x240] ss:$16 sps:$4 sm:$0xff]  }
  0x2d   :  { %1237 = vmatpush1.bf16.msra.mxu0 %v2268_v26  ;;  %1401 = vmatpush1.bf16.msra.mxu1 %v2269_v27  ;;  %v2339_v15 = vld [vmem:[#allocation2 + $0x248] ss:$16 sps:$4 sm:$0xff]   ;;  %v2344_v16 = vld [vmem:[#allocation2 + $0x264] ss:$16 sps:$4 sm:$0xff]   ;;  %v2347_v17 = vld [vmem:[#allocation2 + $0x26c] ss:$16 sps:$4 sm:$0xff]  }
  0x2e   :  { %1238 = vmatprep.subr.bf16.mxu0 %v2270_v28  ;;  %1402 = vmatprep.subr.bf16.mxu1 %v2272_v29  ;;  %v2342_v18 = vld [vmem:[#allocation2 + $0x260] ss:$16 sps:$4 sm:$0xff]   ;;  %v2345_v19 = vld [vmem:[#allocation2 + $0x268] ss:$16 sps:$4 sm:$0xff]   ;;  %v2350_v20 = vld [vmem:[#allocation2 + $0x284] ss:$16 sps:$4 sm:$0xff]  }
  0x2f   :  { %v2353_v21 = vld [vmem:[#allocation2 + $0x28c] ss:$16 sps:$4 sm:$0xff]   ;;  %v2348_v22 = vld [vmem:[#allocation2 + $0x280] ss:$16 sps:$4 sm:$0xff]   ;;  %v2351_v23 = vld [vmem:[#allocation2 + $0x288] ss:$16 sps:$4 sm:$0xff]  }
  0x30   :  { %v2356_v24 = vld [vmem:[#allocation2 + $0x2a4] ss:$16 sps:$4 sm:$0xff]   ;;  %v2359_v25 = vld [vmem:[#allocation2 + $0x2ac] ss:$16 sps:$4 sm:$0xff]   ;;  %v2354_v26 = vld [vmem:[#allocation2 + $0x2a0] ss:$16 sps:$4 sm:$0xff]  }
  0x31   :  { %1239 = vmatpush1.bf16.msra.mxu0 %v2274_v30  ;;  %1403 = vmatpush1.bf16.msra.mxu1 %v2275_v31  ;;  %v2357_v27 = vld [vmem:[#allocation2 + $0x2a8] ss:$16 sps:$4 sm:$0xff]   ;;  %v2362_v28 = vld [vmem:[#allocation2 + $0x2c4] ss:$16 sps:$4 sm:$0xff]   ;;  %v2365_v29 = vld [vmem:[#allocation2 + $0x2cc] ss:$16 sps:$4 sm:$0xff]  }
  0x32   :  { %1240 = vmatprep.subr.bf16.mxu0 %v2276_v32  ;;  %1404 = vmatprep.subr.bf16.mxu1 %v2278_v33  ;;  %v33_v30 = vld [vmem:[%s2772_s0 + $0x18] sm:$0xff]  ;;  %v2360_v31 = vld [vmem:[#allocation2 + $0x2c0] ss:$16 sps:$4 sm:$0xff]   ;;  %v2386_v46 = vld [vmem:[#allocation2 + $0x344] ss:$16 sps:$4 sm:$0xff]  }
  0x33   :  { %v40_v32 = vpack.c.bf16 %v33_v30, %v33_v30  ;;  %v2363_v33 = vld [vmem:[#allocation2 + $0x2c8] ss:$16 sps:$4 sm:$0xff]   ;;  %v2384_v48 = vld [vmem:[#allocation2 + $0x340] ss:$16 sps:$4 sm:$0xff]   ;;  %v2416_v2 = vld [vmem:[#allocation2 + $0x3e4] ss:$16 sps:$4 sm:$0xff]  }
  0x34   :  { %v2452_v30 = vld [vmem:[#allocation2 + $0x4a4] ss:$16 sps:$4 sm:$0xff]  }
  0x35   :  { %1241 = vmatpush1.bf16.msra.mxu0 %v2280_v34  ;;  %1405 = vmatpush1.bf16.msra.mxu1 %v2281_v35  ;;  %v2368_v34 = vld [vmem:[#allocation2 + $0x2e4] ss:$16 sps:$4 sm:$0xff]   ;;  %v2371_v35 = vld [vmem:[#allocation2 + $0x2ec] ss:$16 sps:$4 sm:$0xff]  }
  0x36   :  { %1242 = vmatprep.subr.bf16.mxu0 %v2282_v36  ;;  %1406 = vmatprep.subr.bf16.mxu1 %v2284_v37  ;;  %v2366_v36 = vld [vmem:[#allocation2 + $0x2e0] ss:$16 sps:$4 sm:$0xff]   ;;  %v2369_v37 = vld [vmem:[#allocation2 + $0x2e8] ss:$16 sps:$4 sm:$0xff]  }
  0x39   :  { %1243 = vmatpush1.bf16.msra.mxu0 %v2286_v38  ;;  %1407 = vmatpush1.bf16.msra.mxu1 %v2287_v39  ;;  %v2374_v38 = vld [vmem:[#allocation2 + $0x304] ss:$16 sps:$4 sm:$0xff]   ;;  %v2377_v39 = vld [vmem:[#allocation2 + $0x30c] ss:$16 sps:$4 sm:$0xff]  }
  0x3a   :  { %1244 = vmatprep.subr.bf16.mxu0 %v2288_v40  ;;  %1408 = vmatprep.subr.bf16.mxu1 %v2290_v41  ;;  %v2372_v40 = vld [vmem:[#allocation2 + $0x300] ss:$16 sps:$4 sm:$0xff]   ;;  %v2375_v41 = vld [vmem:[#allocation2 + $0x308] ss:$16 sps:$4 sm:$0xff]  }
  0x3d   :  { %1245 = vmatpush1.bf16.msra.mxu0 %v2292_v42  ;;  %1409 = vmatpush1.bf16.msra.mxu1 %v2293_v43  ;;  %v2380_v42 = vld [vmem:[#allocation2 + $0x324] ss:$16 sps:$4 sm:$0xff]   ;;  %v2383_v43 = vld [vmem:[#allocation2 + $0x32c] ss:$16 sps:$4 sm:$0xff]  }
  0x3e   :  { %1246 = vmatprep.subr.bf16.mxu0 %v2294_v44  ;;  %1410 = vmatprep.subr.bf16.mxu1 %v2296_v45  ;;  %v2378_v44 = vld [vmem:[#allocation2 + $0x320] ss:$16 sps:$4 sm:$0xff]   ;;  %v2381_v45 = vld [vmem:[#allocation2 + $0x328] ss:$16 sps:$4 sm:$0xff]  }
  0x41   :  { %1247 = vmatpush1.bf16.msra.mxu0 %v2298_v47  ;;  %1411 = vmatpush1.bf16.msra.mxu1 %v2299_v49  ;;  %v2389_v47 = vld [vmem:[#allocation2 + $0x34c] ss:$16 sps:$4 sm:$0xff]   ;;  %v2387_v49 = vld [vmem:[#allocation2 + $0x348] ss:$16 sps:$4 sm:$0xff]  }
  0x42   :  { %1248 = vmatprep.subr.bf16.mxu0 %v2300_v50  ;;  %1412 = vmatprep.subr.bf16.mxu1 %v2302_v51  ;;  %v2392_v50 = vld [vmem:[#allocation2 + $0x364] ss:$16 sps:$4 sm:$0xff]   ;;  %v2395_v51 = vld [vmem:[#allocation2 + $0x36c] ss:$16 sps:$4 sm:$0xff]  }
  0x45   :  { %1249 = vmatpush1.bf16.msra.mxu0 %v2304_v52  ;;  %1413 = vmatpush1.bf16.msra.mxu1 %v2305_v53  ;;  %v2390_v52 = vld [vmem:[#allocation2 + $0x360] ss:$16 sps:$4 sm:$0xff]   ;;  %v2393_v53 = vld [vmem:[#allocation2 + $0x368] ss:$16 sps:$4 sm:$0xff]  }
  0x46   :  { %1250 = vmatprep.subr.bf16.mxu0 %v2306_v54  ;;  %1414 = vmatprep.subr.bf16.mxu1 %v2308_v55  ;;  %v2398_v54 = vld [vmem:[#allocation2 + $0x384] ss:$16 sps:$4 sm:$0xff]   ;;  %v2401_v55 = vld [vmem:[#allocation2 + $0x38c] ss:$16 sps:$4 sm:$0xff]  }
  0x49   :  { %1251 = vmatpush1.bf16.msra.mxu0 %v2310_v56  ;;  %1415 = vmatpush1.bf16.msra.mxu1 %v2311_v57  ;;  %v2396_v56 = vld [vmem:[#allocation2 + $0x380] ss:$16 sps:$4 sm:$0xff]   ;;  %v2399_v57 = vld [vmem:[#allocation2 + $0x388] ss:$16 sps:$4 sm:$0xff]  }
  0x4a   :  { %1252 = vmatprep.subr.bf16.mxu0 %v2312_v58  ;;  %1416 = vmatprep.subr.bf16.mxu1 %v2314_v59  ;;  %v2404_v58 = vld [vmem:[#allocation2 + $0x3a4] ss:$16 sps:$4 sm:$0xff]   ;;  %v2407_v59 = vld [vmem:[#allocation2 + $0x3ac] ss:$16 sps:$4 sm:$0xff]  }
  0x4d   :  { %1253 = vmatpush1.bf16.msra.mxu0 %v2316_v60  ;;  %1417 = vmatpush1.bf16.msra.mxu1 %v2317_v61  ;;  %v2402_v60 = vld [vmem:[#allocation2 + $0x3a0] ss:$16 sps:$4 sm:$0xff]   ;;  %v2405_v61 = vld [vmem:[#allocation2 + $0x3a8] ss:$16 sps:$4 sm:$0xff]  }
  0x4e   :  { %1254 = vmatprep.subr.bf16.mxu0 %v2318_v62  ;;  %1418 = vmatprep.subr.bf16.mxu1 %v2320_v63  ;;  %v2410_v62 = vld [vmem:[#allocation2 + $0x3c4] ss:$16 sps:$4 sm:$0xff]   ;;  %v2413_v63 = vld [vmem:[#allocation2 + $0x3cc] ss:$16 sps:$4 sm:$0xff]  }
  0x51   :  { %1255 = vmatpush1.bf16.msra.mxu0 %v2322_v0  ;;  %1419 = vmatpush1.bf16.msra.mxu1 %v2323_v1  ;;  %v2408_v0 = vld [vmem:[#allocation2 + $0x3c0] ss:$16 sps:$4 sm:$0xff]   ;;  %v2411_v1 = vld [vmem:[#allocation2 + $0x3c8] ss:$16 sps:$4 sm:$0xff]  }
  0x52   :  { %1265 = vmatprep.subr.bf16.mxu0 %v2326_v3  ;;  %1429 = vmatprep.subr.bf16.mxu1 %v2329_v4  ;;  %v2419_v3 = vld [vmem:[#allocation2 + $0x3ec] ss:$16 sps:$4 sm:$0xff]   ;;  %v2414_v4 = vld [vmem:[#allocation2 + $0x3e0] ss:$16 sps:$4 sm:$0xff]  }
  0x54   :  { %1257 = vmatmul.mubr.bf16.vlgmr.msra.gmra.mrb[0].mxu0 %v37_v5  ;;  %1421 = vmatmul.mubr.bf16.vlgmr.msra.gmra.mrb[0].mxu1 %v37_v5  ;;  %v2417_v5 = vld [vmem:[#allocation2 + $0x3e8] ss:$16 sps:$4 sm:$0xff]  }
  0x55   :  { %1266 = vmatpush1.bf16.msra.mxu0 %v2324_v6  ;;  %1430 = vmatpush1.bf16.msra.mxu1 %v2327_v7  ;;  %v2422_v6 = vld [vmem:[#allocation2 + $0x404] ss:$16 sps:$4 sm:$0xff]  }
  0x56   :  { %1267 = vmatprep.subr.bf16.mxu0 %v2332_v8  ;;  %1431 = vmatprep.subr.bf16.mxu1 %v2335_v9  ;;  %v32_v7 = vld [vmem:[%s2772_s0 + $0x10] sm:$0xff]  ;;  %v2425_v8 = vld [vmem:[#allocation2 + $0x40c] ss:$16 sps:$4 sm:$0xff]  }
  0x57   :  { %1297 = vmatprep.mubr.bf16.mxu0 %v40_v32  ;;  %1461 = vmatprep.mubr.bf16.mxu1 %v40_v32  ;;  %v2420_v9 = vld [vmem:[#allocation2 + $0x400] ss:$16 sps:$4 sm:$0xff]  }
  0x58   :  { %v2450_v32 = vld [vmem:[#allocation2 + $0x4a0] ss:$16 sps:$4 sm:$0xff]  }
  0x59   :  { %1268 = vmatpush1.bf16.msra.mxu0 %v2330_v10  ;;  %1432 = vmatpush1.bf16.msra.mxu1 %v2333_v11  ;;  %v39_v10 = vpack.c.bf16 %v32_v7, %v32_v7  ;;  %v2423_v11 = vld [vmem:[#allocation2 + $0x408] ss:$16 sps:$4 sm:$0xff]   ;;  %v2515_v7 = vld [vmem:[#allocation2 + $0x5ec] ss:$16 sps:$4 sm:$0xff]  }
  0x5a   :  { %1269 = vmatprep.subr.bf16.mxu0 %v2338_v12  ;;  %1433 = vmatprep.subr.bf16.mxu1 %v2341_v13  ;;  %v2428_v12 = vld [vmem:[#allocation2 + $0x424] ss:$16 sps:$4 sm:$0xff]   ;;  %v2431_v13 = vld [vmem:[#allocation2 + $0x42c] ss:$16 sps:$4 sm:$0xff]  }
  0x5d   :  { %1270 = vmatpush1.bf16.msra.mxu0 %v2336_v14  ;;  %1434 = vmatpush1.bf16.msra.mxu1 %v2339_v15  ;;  %v35_v14 = vld [vmem:[%s2772_s0 + $0x28] sm:$0xff] }
  0x5e   :  { %1271 = vmatprep.subr.bf16.mxu0 %v2344_v16  ;;  %1435 = vmatprep.subr.bf16.mxu1 %v2347_v17  ;;  %v42_v15 = vpack.c.bf16 %v35_v14, %v35_v14  ;;  %v2426_v16 = vld [vmem:[#allocation2 + $0x420] ss:$16 sps:$4 sm:$0xff]   ;;  %v2429_v17 = vld [vmem:[#allocation2 + $0x428] ss:$16 sps:$4 sm:$0xff]  }
  0x5f   :  { %v2516_v14 = vld [vmem:[#allocation2 + $0x600] ss:$16 sps:$4 sm:$0xff]  }
  0x61   :  { %1272 = vmatpush1.bf16.msra.mxu0 %v2342_v18  ;;  %1436 = vmatpush1.bf16.msra.mxu1 %v2345_v19  ;;  %v2434_v18 = vld [vmem:[#allocation2 + $0x444] ss:$16 sps:$4 sm:$0xff]   ;;  %v2437_v19 = vld [vmem:[#allocation2 + $0x44c] ss:$16 sps:$4 sm:$0xff]  }
  0x62   :  { %1273 = vmatprep.subr.bf16.mxu0 %v2350_v20  ;;  %1437 = vmatprep.subr.bf16.mxu1 %v2353_v21  ;;  %v2432_v20 = vld [vmem:[#allocation2 + $0x440] ss:$16 sps:$4 sm:$0xff]   ;;  %v2435_v21 = vld [vmem:[#allocation2 + $0x448] ss:$16 sps:$4 sm:$0xff]  }
  0x65   :  { %1274 = vmatpush1.bf16.msra.mxu0 %v2348_v22  ;;  %1438 = vmatpush1.bf16.msra.mxu1 %v2351_v23  ;;  %v2440_v22 = vld [vmem:[#allocation2 + $0x464] ss:$16 sps:$4 sm:$0xff]   ;;  %v2443_v23 = vld [vmem:[#allocation2 + $0x46c] ss:$16 sps:$4 sm:$0xff]  }
  0x66   :  { %1275 = vmatprep.subr.bf16.mxu0 %v2356_v24  ;;  %1439 = vmatprep.subr.bf16.mxu1 %v2359_v25  ;;  %v2438_v24 = vld [vmem:[#allocation2 + $0x460] ss:$16 sps:$4 sm:$0xff]   ;;  %v2441_v25 = vld [vmem:[#allocation2 + $0x468] ss:$16 sps:$4 sm:$0xff]  }
  0x69   :  { %1276 = vmatpush1.bf16.msra.mxu0 %v2354_v26  ;;  %1440 = vmatpush1.bf16.msra.mxu1 %v2357_v27  ;;  %v2446_v26 = vld [vmem:[#allocation2 + $0x484] ss:$16 sps:$4 sm:$0xff]   ;;  %v2449_v27 = vld [vmem:[#allocation2 + $0x48c] ss:$16 sps:$4 sm:$0xff]  }
  0x6a   :  { %1277 = vmatprep.subr.bf16.mxu0 %v2362_v28  ;;  %1441 = vmatprep.subr.bf16.mxu1 %v2365_v29  ;;  %v2444_v28 = vld [vmem:[#allocation2 + $0x480] ss:$16 sps:$4 sm:$0xff]   ;;  %v2447_v29 = vld [vmem:[#allocation2 + $0x488] ss:$16 sps:$4 sm:$0xff]  }
  0x6d   :  { %1278 = vmatpush1.bf16.msra.mxu0 %v2360_v31  ;;  %1442 = vmatpush1.bf16.msra.mxu1 %v2363_v33  ;;  %v2455_v31 = vld [vmem:[#allocation2 + $0x4ac] ss:$16 sps:$4 sm:$0xff]   ;;  %v2453_v33 = vld [vmem:[#allocation2 + $0x4a8] ss:$16 sps:$4 sm:$0xff]  }
  0x6e   :  { %1279 = vmatprep.subr.bf16.mxu0 %v2368_v34  ;;  %1443 = vmatprep.subr.bf16.mxu1 %v2371_v35  ;;  %v2458_v34 = vld [vmem:[#allocation2 + $0x4c4] ss:$16 sps:$4 sm:$0xff]   ;;  %v2461_v35 = vld [vmem:[#allocation2 + $0x4cc] ss:$16 sps:$4 sm:$0xff]  }
  0x71   :  { %1280 = vmatpush1.bf16.msra.mxu0 %v2366_v36  ;;  %1444 = vmatpush1.bf16.msra.mxu1 %v2369_v37  ;;  %v2456_v36 = vld [vmem:[#allocation2 + $0x4c0] ss:$16 sps:$4 sm:$0xff]   ;;  %v2459_v37 = vld [vmem:[#allocation2 + $0x4c8] ss:$16 sps:$4 sm:$0xff]  }
  0x72   :  { %1281 = vmatprep.subr.bf16.mxu0 %v2374_v38  ;;  %1445 = vmatprep.subr.bf16.mxu1 %v2377_v39  ;;  %v2464_v38 = vld [vmem:[#allocation2 + $0x4e4] ss:$16 sps:$4 sm:$0xff]   ;;  %v2467_v39 = vld [vmem:[#allocation2 + $0x4ec] ss:$16 sps:$4 sm:$0xff]  }
  0x75   :  { %1282 = vmatpush1.bf16.msra.mxu0 %v2372_v40  ;;  %1446 = vmatpush1.bf16.msra.mxu1 %v2375_v41  ;;  %v2462_v40 = vld [vmem:[#allocation2 + $0x4e0] ss:$16 sps:$4 sm:$0xff]   ;;  %v2465_v41 = vld [vmem:[#allocation2 + $0x4e8] ss:$16 sps:$4 sm:$0xff]  }
  0x76   :  { %1283 = vmatprep.subr.bf16.mxu0 %v2380_v42  ;;  %1447 = vmatprep.subr.bf16.mxu1 %v2383_v43  ;;  %v2470_v42 = vld [vmem:[#allocation2 + $0x504] ss:$16 sps:$4 sm:$0xff]   ;;  %v2473_v43 = vld [vmem:[#allocation2 + $0x50c] ss:$16 sps:$4 sm:$0xff]  }
  0x79   :  { %1284 = vmatpush1.bf16.msra.mxu0 %v2378_v44  ;;  %1448 = vmatpush1.bf16.msra.mxu1 %v2381_v45  ;;  %v2468_v44 = vld [vmem:[#allocation2 + $0x500] ss:$16 sps:$4 sm:$0xff]   ;;  %v2471_v45 = vld [vmem:[#allocation2 + $0x508] ss:$16 sps:$4 sm:$0xff]  }
  0x7a   :  { %1285 = vmatprep.subr.bf16.mxu0 %v2386_v46  ;;  %1449 = vmatprep.subr.bf16.mxu1 %v2389_v47  ;;  %v2476_v46 = vld [vmem:[#allocation2 + $0x524] ss:$16 sps:$4 sm:$0xff]   ;;  %v2479_v47 = vld [vmem:[#allocation2 + $0x52c] ss:$16 sps:$4 sm:$0xff]  }
  0x7d   :  { %1286 = vmatpush1.bf16.msra.mxu0 %v2384_v48  ;;  %1450 = vmatpush1.bf16.msra.mxu1 %v2387_v49  ;;  %v2474_v48 = vld [vmem:[#allocation2 + $0x520] ss:$16 sps:$4 sm:$0xff]   ;;  %v2477_v49 = vld [vmem:[#allocation2 + $0x528] ss:$16 sps:$4 sm:$0xff]  }
  0x7e   :  { %1287 = vmatprep.subr.bf16.mxu0 %v2392_v50  ;;  %1451 = vmatprep.subr.bf16.mxu1 %v2395_v51  ;;  %v2482_v50 = vld [vmem:[#allocation2 + $0x544] ss:$16 sps:$4 sm:$0xff]   ;;  %v2485_v51 = vld [vmem:[#allocation2 + $0x54c] ss:$16 sps:$4 sm:$0xff]  }
  0x81   :  { %1288 = vmatpush1.bf16.msra.mxu0 %v2390_v52  ;;  %1452 = vmatpush1.bf16.msra.mxu1 %v2393_v53  ;;  %v2480_v52 = vld [vmem:[#allocation2 + $0x540] ss:$16 sps:$4 sm:$0xff]   ;;  %v2483_v53 = vld [vmem:[#allocation2 + $0x548] ss:$16 sps:$4 sm:$0xff]  }
  0x82   :  { %1289 = vmatprep.subr.bf16.mxu0 %v2398_v54  ;;  %1453 = vmatprep.subr.bf16.mxu1 %v2401_v55  ;;  %v2488_v54 = vld [vmem:[#allocation2 + $0x564] ss:$16 sps:$4 sm:$0xff]   ;;  %v2491_v55 = vld [vmem:[#allocation2 + $0x56c] ss:$16 sps:$4 sm:$0xff]  }
  0x85   :  { %1290 = vmatpush1.bf16.msra.mxu0 %v2396_v56  ;;  %1454 = vmatpush1.bf16.msra.mxu1 %v2399_v57  ;;  %v2486_v56 = vld [vmem:[#allocation2 + $0x560] ss:$16 sps:$4 sm:$0xff]   ;;  %v2489_v57 = vld [vmem:[#allocation2 + $0x568] ss:$16 sps:$4 sm:$0xff]  }
  0x86   :  { %1291 = vmatprep.subr.bf16.mxu0 %v2404_v58  ;;  %1455 = vmatprep.subr.bf16.mxu1 %v2407_v59  ;;  %v2494_v58 = vld [vmem:[#allocation2 + $0x584] ss:$16 sps:$4 sm:$0xff]   ;;  %v2497_v59 = vld [vmem:[#allocation2 + $0x58c] ss:$16 sps:$4 sm:$0xff]  }
  0x89   :  { %1292 = vmatpush1.bf16.msra.mxu0 %v2402_v60  ;;  %1456 = vmatpush1.bf16.msra.mxu1 %v2405_v61  ;;  %v2492_v60 = vld [vmem:[#allocation2 + $0x580] ss:$16 sps:$4 sm:$0xff]   ;;  %v2495_v61 = vld [vmem:[#allocation2 + $0x588] ss:$16 sps:$4 sm:$0xff]  }
  0x8a   :  { %1293 = vmatprep.subr.bf16.mxu0 %v2410_v62  ;;  %1457 = vmatprep.subr.bf16.mxu1 %v2413_v63  ;;  %v2500_v62 = vld [vmem:[#allocation2 + $0x5a4] ss:$16 sps:$4 sm:$0xff]   ;;  %v2503_v63 = vld [vmem:[#allocation2 + $0x5ac] ss:$16 sps:$4 sm:$0xff]  }
  0x8d   :  { %1294 = vmatpush1.bf16.msra.mxu0 %v2408_v0  ;;  %1458 = vmatpush1.bf16.msra.mxu1 %v2411_v1  ;;  %v2498_v0 = vld [vmem:[#allocation2 + $0x5a0] ss:$16 sps:$4 sm:$0xff]   ;;  %v2501_v1 = vld [vmem:[#allocation2 + $0x5a8] ss:$16 sps:$4 sm:$0xff]  }
  0x8e   :  { %1295 = vmatprep.subr.bf16.mxu0 %v2416_v2  ;;  %1459 = vmatprep.subr.bf16.mxu1 %v2419_v3  ;;  %v2506_v2 = vld [vmem:[#allocation2 + $0x5c4] ss:$16 sps:$4 sm:$0xff]   ;;  %v2509_v3 = vld [vmem:[#allocation2 + $0x5cc] ss:$16 sps:$4 sm:$0xff]  }
  0x91   :  { %1296 = vmatpush1.bf16.msra.mxu0 %v2414_v4  ;;  %1460 = vmatpush1.bf16.msra.mxu1 %v2417_v5  ;;  %v2504_v4 = vld [vmem:[#allocation2 + $0x5c0] ss:$16 sps:$4 sm:$0xff]   ;;  %v2507_v5 = vld [vmem:[#allocation2 + $0x5c8] ss:$16 sps:$4 sm:$0xff]  }
  0x92   :  { %1306 = vmatprep.subr.bf16.mxu0 %v2422_v6  ;;  %1470 = vmatprep.subr.bf16.mxu1 %v2425_v8  ;;  %v2512_v6 = vld [vmem:[#allocation2 + $0x5e4] ss:$16 sps:$4 sm:$0xff]   ;;  %v2510_v8 = vld [vmem:[#allocation2 + $0x5e0] ss:$16 sps:$4 sm:$0xff]  }
  0x94   :  { %1298 = vmatmul.mubr.bf16.vlgmr.msra.gmra.mrb[0].mxu0 %v39_v10  ;;  %1462 = vmatmul.mubr.bf16.vlgmr.msra.gmra.mrb[0].mxu1 %v39_v10  ;;  %v34_v10 = vld [vmem:[%s2772_s0 + $0x20] sm:$0xff] }
  0x95   :  { %1307 = vmatpush1.bf16.msra.mxu0 %v2420_v9  ;;  %1471 = vmatpush1.bf16.msra.mxu1 %v2423_v11  ;;  %v2513_v9 = vld [vmem:[#allocation2 + $0x5e8] ss:$16 sps:$4 sm:$0xff]   ;;  %v2518_v11 = vld [vmem:[#allocation2 + $0x604] ss:$16 sps:$4 sm:$0xff]  }
  0x96   :  { %1308 = vmatprep.subr.bf16.mxu0 %v2428_v12  ;;  %1472 = vmatprep.subr.bf16.mxu1 %v2431_v13  ;;  %v2521_v12 = vld [vmem:[#allocation2 + $0x60c] ss:$16 sps:$4 sm:$0xff]   ;;  %v41_v13 = vpack.c.bf16 %v34_v10, %v34_v10 }
  0x97   :  { %1338 = vmatprep.mubr.bf16.mxu0 %v42_v15  ;;  %1502 = vmatprep.mubr.bf16.mxu1 %v42_v15  ;;  %v2519_v15 = vld [vmem:[#allocation2 + $0x608] ss:$16 sps:$4 sm:$0xff]  }
  0x99   :  { %1309 = vmatpush1.bf16.msra.mxu0 %v2426_v16  ;;  %1473 = vmatpush1.bf16.msra.mxu1 %v2429_v17  ;;  %v2522_v16 = vld [vmem:[%s2774_s2 + $0x40] sm:$0xff]  }
  0x9a   :  { %1310 = vmatprep.subr.bf16.mxu0 %v2434_v18  ;;  %1474 = vmatprep.subr.bf16.mxu1 %v2437_v19  ;;  %v2523_v17 = vld [vmem:[%s2774_s2 + $0xc0] sm:$0xff]   ;;  %v2609_v18 = vmov 0   ;;  %v36_v19 = vld [vmem:[%s2772_s0 + $0x30] sm:$0xff] }
  0x9d   :  { %1311 = vmatpush1.bf16.msra.mxu0 %v2432_v20  ;;  %1475 = vmatpush1.bf16.msra.mxu1 %v2435_v21  ;;  %v43_v20 = vpack.c.bf16 %v36_v19, %v36_v19  ;;  %v2524_v21 = vld [vmem:[%s2774_s2] sm:$0xff]  }
  0x9e   :  { %1312 = vmatprep.subr.bf16.mxu0 %v2440_v22  ;;  %1476 = vmatprep.subr.bf16.mxu1 %v2443_v23  ;;  %v2525_v22 = vld [vmem:[%s2774_s2 + $0x80] sm:$0xff]   ;;  %v2526_v23 = vld [vmem:[%s2774_s2 + $0x48] sm:$0xff]  }
  0xa1   :  { %1313 = vmatpush1.bf16.msra.mxu0 %v2438_v24  ;;  %1477 = vmatpush1.bf16.msra.mxu1 %v2441_v25  ;;  %v2527_v24 = vld [vmem:[%s2774_s2 + $0xc8] sm:$0xff]  }
  0xa2   :  { %1314 = vmatprep.subr.bf16.mxu0 %v2446_v26  ;;  %1478 = vmatprep.subr.bf16.mxu1 %v2449_v27  ;;  %v2528_v25 = vld [vmem:[%s2774_s2 + $0x8] sm:$0xff]   ;;  %v2530_v27 = vld [vmem:[%s2774_s2 + $0x50] sm:$0xff]  }
  0xa3   :  { %v2529_v26 = vld [vmem:[%s2774_s2 + $0x88] sm:$0xff]  }
  0xa5   :  { %1315 = vmatpush1.bf16.msra.mxu0 %v2444_v28  ;;  %1479 = vmatpush1.bf16.msra.mxu1 %v2447_v29  ;;  %v2531_v28 = vld [vmem:[%s2774_s2 + $0xd0] sm:$0xff]  }
  0xa6   :  { %1316 = vmatprep.subr.bf16.mxu0 %v2452_v30  ;;  %1480 = vmatprep.subr.bf16.mxu1 %v2455_v31  ;;  %v2532_v29 = vld [vmem:[%s2774_s2 + $0x10] sm:$0xff]   ;;  %v2534_v31 = vld [vmem:[%s2774_s2 + $0x58] sm:$0xff]  }
  0xa7   :  { %v2533_v30 = vld [vmem:[%s2774_s2 + $0x90] sm:$0xff]  }
  0xa9   :  { %1317 = vmatpush1.bf16.msra.mxu0 %v2450_v32  ;;  %1481 = vmatpush1.bf16.msra.mxu1 %v2453_v33  ;;  %v2535_v32 = vld [vmem:[%s2774_s2 + $0xd8] sm:$0xff]  }
  0xaa   :  { %1318 = vmatprep.subr.bf16.mxu0 %v2458_v34  ;;  %1482 = vmatprep.subr.bf16.mxu1 %v2461_v35  ;;  %v2536_v33 = vld [vmem:[%s2774_s2 + $0x18] sm:$0xff]   ;;  %v2538_v35 = vld [vmem:[%s2774_s2 + $0x60] sm:$0xff]  }
  0xab   :  { %v2537_v34 = vld [vmem:[%s2774_s2 + $0x98] sm:$0xff]  }
  0xad   :  { %1319 = vmatpush1.bf16.msra.mxu0 %v2456_v36  ;;  %1483 = vmatpush1.bf16.msra.mxu1 %v2459_v37  ;;  %v2539_v36 = vld [vmem:[%s2774_s2 + $0xe0] sm:$0xff]  }
  0xae   :  { %1320 = vmatprep.subr.bf16.mxu0 %v2464_v38  ;;  %1484 = vmatprep.subr.bf16.mxu1 %v2467_v39  ;;  %v2540_v37 = vld [vmem:[%s2774_s2 + $0x20] sm:$0xff]   ;;  %v2542_v39 = vld [vmem:[%s2774_s2 + $0x68] sm:$0xff]  }
  0xaf   :  { %v2541_v38 = vld [vmem:[%s2774_s2 + $0xa0] sm:$0xff]  }
  0xb1   :  { %1321 = vmatpush1.bf16.msra.mxu0 %v2462_v40  ;;  %1485 = vmatpush1.bf16.msra.mxu1 %v2465_v41  ;;  %v2543_v40 = vld [vmem:[%s2774_s2 + $0xe8] sm:$0xff]  }
  0xb2   :  { %1322 = vmatprep.subr.bf16.mxu0 %v2470_v42  ;;  %1486 = vmatprep.subr.bf16.mxu1 %v2473_v43  ;;  %v2544_v41 = vld [vmem:[%s2774_s2 + $0x28] sm:$0xff]   ;;  %v2546_v43 = vld [vmem:[%s2774_s2 + $0x70] sm:$0xff]  }
  0xb3   :  { %v2545_v42 = vld [vmem:[%s2774_s2 + $0xa8] sm:$0xff]  }
  0xb5   :  { %1323 = vmatpush1.bf16.msra.mxu0 %v2468_v44  ;;  %1487 = vmatpush1.bf16.msra.mxu1 %v2471_v45  ;;  %v2547_v44 = vld [vmem:[%s2774_s2 + $0xf0] sm:$0xff]  }
  0xb6   :  { %1324 = vmatprep.subr.bf16.mxu0 %v2476_v46  ;;  %1488 = vmatprep.subr.bf16.mxu1 %v2479_v47  ;;  %v2548_v45 = vld [vmem:[%s2774_s2 + $0x30] sm:$0xff]   ;;  %v2550_v47 = vld [vmem:[%s2774_s2 + $0x78] sm:$0xff]  }
  0xb7   :  { %v2549_v46 = vld [vmem:[%s2774_s2 + $0xb0] sm:$0xff]  }
  0xb9   :  { %1325 = vmatpush1.bf16.msra.mxu0 %v2474_v48  ;;  %1489 = vmatpush1.bf16.msra.mxu1 %v2477_v49  ;;  %v2551_v48 = vld [vmem:[%s2774_s2 + $0xf8] sm:$0xff]  }
  0xba   :  { %1326 = vmatprep.subr.bf16.mxu0 %v2482_v50  ;;  %1490 = vmatprep.subr.bf16.mxu1 %v2485_v51  ;;  %v2552_v49 = vld [vmem:[%s2774_s2 + $0x38] sm:$0xff]  }
  0xbb   :  { %v2553_v50 = vld [vmem:[%s2774_s2 + $0xb8] sm:$0xff]   ;;  %s2610_s2 = smov [#allocation5]  }
  0xbc   :  { %s1916_s18 = sshll.u32 %s2610_s2, 4  ;;  %s1917_s18 = int_to_ptr.vmem [resolvable:$true] %s1916_s18 }
  0xbd   :  { %1327 = vmatpush1.bf16.msra.mxu0 %v2480_v52  ;;  %1491 = vmatpush1.bf16.msra.mxu1 %v2483_v53  ;;  %s2580_s19 = scalar_lea.vmem %s1917_s18, 128  ;;  %p2585_p9 = scmp.lt.s32.totalorder %s1917_s18, %s1917_s18 }
  0xbe   :  { %1328 = vmatprep.subr.bf16.mxu0 %v2488_v54  ;;  %1492 = vmatprep.subr.bf16.mxu1 %v2491_v55  ;;  %p2581_p8 = scmp.ne.s32.totalorder %s1917_s18, %s2580_s19  ;;  %p2586_p10 = scmp.lt.s32.totalorder %s2580_s19, %s2580_s19 }
  0xc0   :  { %p2587_p11 = por %p2586_p10, %p2585_p9 }
  0xc1   :  { %1329 = vmatpush1.bf16.msra.mxu0 %v2486_v56  ;;  %1493 = vmatpush1.bf16.msra.mxu1 %v2489_v57 }
  0xc2   :  { %1330 = vmatprep.subr.bf16.mxu0 %v2494_v58  ;;  %1494 = vmatprep.subr.bf16.mxu1 %v2497_v59  ;;  %p2588_p12 = pnand %p2587_p11, %p2581_p8 }
  0xc5   :  { %1331 = vmatpush1.bf16.msra.mxu0 %v2492_v60  ;;  %1495 = vmatpush1.bf16.msra.mxu1 %v2495_v61 }
  0xc6   :  { %1332 = vmatprep.subr.bf16.mxu0 %v2500_v62  ;;  %1496 = vmatprep.subr.bf16.mxu1 %v2503_v63 }
  0xc9   :  { %1333 = vmatpush1.bf16.msra.mxu0 %v2498_v0  ;;  %1497 = vmatpush1.bf16.msra.mxu1 %v2501_v1 }
  0xca   :  { %1334 = vmatprep.subr.bf16.mxu0 %v2506_v2  ;;  %1498 = vmatprep.subr.bf16.mxu1 %v2509_v3  ;;  %v1896_v3 = vlaneseq }
  0xcd   :  { %1335 = vmatpush1.bf16.msra.mxu0 %v2504_v4  ;;  %1499 = vmatpush1.bf16.msra.mxu1 %v2507_v5  ;;  %v1897_v4 = vand.u32 127, %v1896_v3 }
  0xce   :  { %1336 = vmatprep.subr.bf16.mxu0 %v2512_v6  ;;  %1500 = vmatprep.subr.bf16.mxu1 %v2515_v7 }
  0xcf   :  { %vm1898_vm1 = vcmp.lt.s32.totalorder %v1897_v4, 10 }
  0xd1   :  { %1337 = vmatpush1.bf16.msra.mxu0 %v2510_v8  ;;  %1501 = vmatpush1.bf16.msra.mxu1 %v2513_v9 }
  0xd2   :  { %1347 = vmatprep.subr.bf16.mxu0 %v2518_v11  ;;  %1511 = vmatprep.subr.bf16.mxu1 %v2521_v12 }
  0xd4   :  { %1339 = vmatmul.mubr.bf16.vlgmr.msra.gmra.mrb[0].mxu0 %v41_v13  ;;  %1503 = vmatmul.mubr.bf16.vlgmr.msra.gmra.mrb[0].mxu1 %v41_v13 }
  0xd5   :  { %1348 = vmatpush1.bf16.msra.mxu0 %v2516_v14  ;;  %1512 = vmatpush1.bf16.msra.mxu1 %v2519_v15 }
  0xd6   :  { %1379 = vmatprep.mubr.bf16.mxu0 %v2609_v18  ;;  %1543 = vmatprep.mubr.bf16.mxu1 %v2609_v18 }
  0xd7   :  { %2155 = vmatprep.subr.bf16.mxu0 %v2522_v16  ;;  %2177 = vmatprep.subr.bf16.mxu1 %v2523_v17 }
  0xe0   :  { %2121 = vmatmul.mubr.msk.bf16.vlgmr.msra.gmra.mrb[0].mxu0 %vm1220_vm0, %v43_v20  ;;  %2122 = vmatmul.mubr.msk.bf16.vlgmr.msra.gmra.mrb[0].mxu1 %vm1220_vm0, %v43_v20 }
  0xe1   :  { %2156 = vmatpush3.bf16.msra.mxu0 %v2524_v21  ;;  %2178 = vmatpush3.bf16.msra.mxu1 %v2525_v22 }
  0xe2   :  { %2157 = vmatprep.subr.bf16.mxu0 %v2526_v23  ;;  %2179 = vmatprep.subr.bf16.mxu1 %v2527_v24 }
  0xe5   :  { %2158 = vmatpush3.bf16.msra.mxu0 %v2528_v25  ;;  %2180 = vmatpush3.bf16.msra.mxu1 %v2529_v26 }
  0xe6   :  { %2159 = vmatprep.subr.bf16.mxu0 %v2530_v27  ;;  %2181 = vmatprep.subr.bf16.mxu1 %v2531_v28 }
  0xe9   :  { %2160 = vmatpush3.bf16.msra.mxu0 %v2532_v29  ;;  %2182 = vmatpush3.bf16.msra.mxu1 %v2533_v30 }
  0xea   :  { %2161 = vmatprep.subr.bf16.mxu0 %v2534_v31  ;;  %2183 = vmatprep.subr.bf16.mxu1 %v2535_v32 }
  0xed   :  { %2162 = vmatpush3.bf16.msra.mxu0 %v2536_v33  ;;  %2184 = vmatpush3.bf16.msra.mxu1 %v2537_v34 }
  0xee   :  { %2163 = vmatprep.subr.bf16.mxu0 %v2538_v35  ;;  %2185 = vmatprep.subr.bf16.mxu1 %v2539_v36 }
  0xf1   :  { %2164 = vmatpush3.bf16.msra.mxu0 %v2540_v37  ;;  %2186 = vmatpush3.bf16.msra.mxu1 %v2541_v38 }
  0xf2   :  { %2165 = vmatprep.subr.bf16.mxu0 %v2542_v39  ;;  %2187 = vmatprep.subr.bf16.mxu1 %v2543_v40 }
  0xf5   :  { %2166 = vmatpush3.bf16.msra.mxu0 %v2544_v41  ;;  %2188 = vmatpush3.bf16.msra.mxu1 %v2545_v42 }
  0xf6   :  { %2167 = vmatprep.subr.bf16.mxu0 %v2546_v43  ;;  %2189 = vmatprep.subr.bf16.mxu1 %v2547_v44 }
  0xf9   :  { %2168 = vmatpush3.bf16.msra.mxu0 %v2548_v45  ;;  %2190 = vmatpush3.bf16.msra.mxu1 %v2549_v46 }
  0xfa   :  { %2169 = vmatprep.subr.bf16.mxu0 %v2550_v47  ;;  %2191 = vmatprep.subr.bf16.mxu1 %v2551_v48 }
  0xfd   :  { %2170 = vmatpush3.bf16.msra.mxu0 %v2552_v49  ;;  %2192 = vmatpush3.bf16.msra.mxu1 %v2553_v50 }
 0x1b3   :  { %v1381_v51 = vpop.f32.mrb[0].mxu0  ;;  %v1545_v52 = vpop.f32.mrb[0].mxu1 }
 0x1b4   :  { %v1552_v53 = vmax.f32 %v1381_v51, 0.0  ;;  %v1554_v54 = vmax.f32 %v1545_v52, 0.0  ;;  %v1383_v55 = vpop.f32.mrb[1].mxu0  ;;  %v1547_v56 = vpop.f32.mrb[1].mxu1 }
 0x1b5   :  { %v1553_v57 = vmax.f32 %v1383_v55, 0.0  ;;  %v1555_v58 = vmax.f32 %v1547_v56, 0.0  ;;  %v1385_v59 = vpop.f32.mrb[2].mxu0  ;;  %v1549_v60 = vpop.f32.mrb[2].mxu1 }
 0x1b6   :  { %v1386_v61 = vpop.f32.mrb[3].mxu0  ;;  %v1550_v62 = vpop.f32.mrb[3].mxu1  ;;  %v1556_v1 = vpack.c.bf16 %v1552_v53, %v1552_v53  ;;  %v1558_v2 = vpack.c.bf16 %v1554_v54, %v1554_v54 }
 0x1b7   :  { %v1557_v63 = vpack.c.bf16 %v1553_v57, %v1553_v57  ;;  %v1559_v0 = vpack.c.bf16 %v1555_v58, %v1555_v58 }
 0x1b9   :  { %1848 = vmatprep.mubr.bf16.mxu0 %v1557_v63  ;;  %1888 = vmatprep.mubr.bf16.mxu1 %v1559_v0 }
 0x1ba   :  { %1849 = vmatmul.mubr.bf16.vlgmr.msra.gmra.mrb[4].mxu0 %v1556_v1  ;;  %1889 = vmatmul.mubr.bf16.vlgmr.msra.gmra.mrb[4].mxu1 %v1558_v2 }
 0x28d   :  { %v2171_v5 = vpop.f32.mrb[4].mxu0  ;;  %v2193_v6 = vpop.f32.mrb[4].mxu1 }
 0x28e   :  { %v2172_v7 = vpop.f32.mrb[5].mxu0  ;;  %v2194_v8 = vpop.f32.mrb[5].mxu1 }
 0x28f   :  { %v2173_v9 = vadd.f32 %v2172_v7, %v2171_v5  ;;  %v2195_v10 = vadd.f32 %v2194_v8, %v2193_v6  ;;  %v2174_v11 = vpop.f32.mrb[6].mxu0  ;;  %v2196_v12 = vpop.f32.mrb[6].mxu1 }
 0x290   :  { %v2175_v13 = vpop.f32.mrb[7].mxu0  ;;  %v2197_v14 = vpop.f32.mrb[7].mxu1 }
 0x291   :  { %v1891_v15 = vadd.f32 %v2195_v10, %v2173_v9 }
 0x293   :  { %v1899_v16 = vsel %vm1898_vm1, %v1891_v15, -1e+30 }
 0x294   :  { %1900 = vmax.xlane.f32.xlu0 %v1899_v16 }
 0x321   :  { %v1901_v17 = vpop.xlane.xlu0 %1900 }
 0x322   :  { %v1902_v18 = vsub.f32 %v1899_v16, %v1901_v17 }
 0x324   :  { %v1903_v19 = vmul.f32 1.442695, %v1902_v18 }
 0x326   :  { %2554 = vpow2.f32 %v1903_v19 }
 0x330   :  { %v2555_v20 = vpop.eup %2554 }
 0x331   :  { %1905 = vadd.xlane.f32.xlu0 %v2555_v20 }
 0x3be   :  { %v1906_v21 = vpop.xlane.xlu0 %1905 }
 0x3bf   :  { %2556 = vrcp.f32 %v1906_v21 }
 0x3c9   :  { %v2557_v22 = vpop.eup %2556 }
 0x3ca   :  { %v1908_v23 = vmul.f32 %v2557_v22, %v2555_v20 }
 0x3cc   :  { %1909 = vst [vmem:[#allocation5] sm:$0xff] %v1908_v23 }
 0x3cd   :  { %2591 = shalt.err (!%p2588_p12)
}
 0x3ce   :  { %s2592_s22 = scalar_lea.hbm %s2775_s3, 128 }
 0x3cf   :  { %p2593_p13 = scmp.ne.s32.totalorder %s2775_s3, %s2592_s22  ;;  %p2596_p0 = scmp.lt.u32.totalorder %s2592_s22, %s2775_s3 }
 0x3d1   :  { %p2598_p1 = pnand %p2596_p0, %p2593_p13 }
 0x3d3   :  { %2601 = shalt.err (!%p2598_p1)
}
 0x3d4   :  { %1919 = dma.vmem_to_hbm [thread:$0]  %s1917_s18, 128, %s2775_s3, [#allocation4]  }
 0x3d5   :  { %2604 = dma.done.wait [#allocation4], 128  }
 0x3d6   :  { %2605 = vsyncadd [#allocation4], 4294967168 }
 0x3d7   :  { %1923 = vsyncpa [#allocation3], 1 }
 0x3d8   :  { %1924 = vsyncpa [#allocation4], 1 }

</bundles_post_ra>
